<compile_context>
chip_gen: v7x
topology: tpu7x:2x2x1
jax: 0.10.0
libtpu: 0.0.40
codegen_flags: <defaults>
</compile_context>

<pallas_src>
import math
import functools

import jax
import jax.numpy as jnp
from jax.experimental import pallas as pl
from jax.experimental.pallas import tpu as pltpu


# ----------------------------------------------------------------------------
# Kernel
# ----------------------------------------------------------------------------
def _global_max_kernel(x_ref, o_ref, *, s_total, block_s, need_mask, neg_fill):
    """x_ref: (TS, TM) tile of the (S, M) view; o_ref: (1, TM) accumulator."""
    k = pl.program_id(1)                      # reduction-axis grid position (last)

    x = x_ref[...]
    if need_mask:                             # static (trace-time) branch
        row = jax.lax.broadcasted_iota(jnp.int32, x.shape, 0) + k * block_s
        x = jnp.where(row < s_total, x, neg_fill)

    blk_max = jnp.max(x, axis=0, keepdims=True)    # (1, TM)

    @pl.when(k == 0)
    def _():
        o_ref[...] = blk_max.astype(o_ref.dtype)

    @pl.when(k != 0)
    def _():
        o_ref[...] = jnp.maximum(o_ref[...], blk_max).astype(o_ref.dtype)


# ----------------------------------------------------------------------------
# Wrapper
# ----------------------------------------------------------------------------
def global_max_pool(x, dim: int = 0, *, block_s=None, block_m=None):
    """Equivalent of GlobalMaxPooling(dim).forward(x) -> x.max(dim)[0]."""
    x = jnp.asarray(x)
    if x.ndim == 0:
        raise ValueError("global_max_pool requires at least 1-D input")

    # Move the reduced axis to the front (plain-JAX glue, no extra HBM pass
    # beyond what the layout change itself requires).
    if dim != 0:
        x = jnp.moveaxis(x, dim, 0)

    S = x.shape[0]
    rest = x.shape[1:]
    M = math.prod(rest) if rest else 1
    x2 = x.reshape(S, M)
    itemsize = jnp.dtype(x.dtype).itemsize

    # ---- lane tile (last dim): multiple of 128 when possible, else full extent
    if block_m is not None:
        tm = int(block_m)
    elif M % 128 == 0:
        tm = 512
        while M % tm != 0:
            tm //= 2                          # 512 -> 256 -> 128 (128 divides M)
        tm = min(tm, M)
    else:
        tm = M                                # full extent (small / odd M)
        # TODO(synk): very large trailing dims that are not a multiple of 128
        # would deserve a padded lane tiling instead of full-extent blocks.

    # ---- reduction tile (second-to-last dim): ~2 MiB per input block,
    #      multiple of 8 sublanes or full extent.
    if block_s is not None:
        ts = int(block_s)
    else:
        target_bytes = 2 * 1024 * 1024
        ts = max(8, (target_bytes // max(1, tm * itemsize)) // 8 * 8)
        ts = min(ts, S)
    if ts >= S or S <= 8:
        ts = S
    need_mask = (S % ts) != 0

    # Identity element for max, used to mask the ragged tail block.
    if jnp.issubdtype(x.dtype, jnp.floating):
        neg_fill = float("-inf")
    elif jnp.issubdtype(x.dtype, jnp.integer):
        neg_fill = int(jnp.iinfo(x.dtype).min)
    else:
        neg_fill = False

    grid = (pl.cdiv(M, tm), pl.cdiv(S, ts))   # reduction axis last

    out2 = pl.pallas_call(
        functools.partial(
            _global_max_kernel,
            s_total=S,
            block_s=ts,
            need_mask=need_mask,
            neg_fill=neg_fill,
        ),
        out_shape=jax.ShapeDtypeStruct((1, M), x.dtype),
        grid_spec=pltpu.PrefetchScalarGridSpec(
            num_scalar_prefetch=0,
            grid=grid,
            in_specs=[pl.BlockSpec((ts, tm), lambda j, k: (k, j))],
            out_specs=pl.BlockSpec((1, tm), lambda j, k: (0, j)),
        ),
        compiler_params=pltpu.CompilerParams(
            dimension_semantics=("parallel", "arbitrary"),
            vmem_limit_bytes=32 * 1024 * 1024,
        ),
    )(x2)

    return out2.reshape(rest)


# ----------------------------------------------------------------------------
# Demo / self-check
# ----------------------------------------------------------------------------
if __name__ == "__main__":
    key = jax.random.PRNGKey(0)
    k1, k2, k3 = jax.random.split(key, 3)

    # Case 1: (seq=8, batch=2, hidden=128), default dim=0 -> (2, 128)
    x1 = jax.random.normal(k1, (8, 2, 128), dtype=jnp.float32)
    o1 = jax.block_until_ready(global_max_pool(x1, dim=0))
    r1 = jnp.max(x1, axis=0)
    assert o1.shape == r1.shape and o1.dtype == r1.dtype
    assert jnp.array_equal(o1, r1)

    # Case 2: longer reduction with a ragged tail block (exercises the mask
    # and the multi-step running-max accumulator): (200, 4, 128), TS=64.
    x2 = jax.random.normal(k2, (200, 4, 128), dtype=jnp.float32)
    o2 = jax.block_until_ready(global_max_pool(x2, dim=0, block_s=64))
    r2 = jnp.max(x2, axis=0)
    assert jnp.array_equal(o2, r2)

    # Case 3: non-default reduction axis, lane dim not a multiple of 128.
    x3 = jax.random.normal(k3, (2, 16, 32), dtype=jnp.float32)
    o3 = jax.block_until_ready(global_max_pool(x3, dim=1))
    r3 = jnp.max(x3, axis=1)
    assert jnp.array_equal(o3, r3)

    print("KERNEL_OK")
</pallas_src>

<mosaic_0001>
module attributes {stable_mosaic.version = 11 : i64} {
  func.func @_global_max_kernel(%arg0: i32, %arg1: i32, %arg2: memref<8x256xf32, #tpu.memory_space<vmem>>, %arg3: memref<1x256xf32, #tpu.memory_space<vmem>>) attributes {dimension_semantics = [#tpu.dimension_semantics<parallel>, #tpu.dimension_semantics<arbitrary>], iteration_bounds = array<i64: 1, 1>, scalar_prefetch = 0 : i64, scratch_operands = 0 : i64, tpu.core_type = #tpu.core_type<tc>, window_params = [{transform_indices = @transform_0, window_bounds = array<i64: 8, 256>}, {transform_indices = @transform_1, window_bounds = array<i64: 1, 256>}]} {
    %c0 = arith.constant 0 : index
    %c0_0 = arith.constant 0 : index
    %0 = vector.load %arg2[%c0, %c0_0] : memref<8x256xf32, #tpu.memory_space<vmem>>, vector<8x256xf32>
    %cst = arith.constant dense<0xFF800000> : vector<256xf32>
    %1 = vector.multi_reduction <maximumf>, %0, %cst [0] : vector<8x256xf32> to vector<256xf32>
    %2 = vector.shape_cast %1 : vector<256xf32> to vector<1x256xf32>
    %c0_i32 = arith.constant 0 : i32
    %3 = arith.cmpi eq, %arg1, %c0_i32 : i32
    %4 = arith.extui %3 : i1 to i32
    %c0_i32_1 = arith.constant 0 : i32
    %5 = arith.cmpi ne, %4, %c0_i32_1 : i32
    scf.if %5 {
      %c0_4 = arith.constant 0 : index
      %c0_5 = arith.constant 0 : index
      %9 = vector.load %arg3[%c0_4, %c0_5] : memref<1x256xf32, #tpu.memory_space<vmem>>, vector<1x256xf32>
      tpu.vector_store %arg3[%c0_4, %c0_5], %2 {strides = array<i32>} : memref<1x256xf32, #tpu.memory_space<vmem>>, vector<1x256xf32>,
    } else {
    }
    %c0_i32_2 = arith.constant 0 : i32
    %6 = arith.cmpi ne, %arg1, %c0_i32_2 : i32
    %7 = arith.extui %6 : i1 to i32
    %c0_i32_3 = arith.constant 0 : i32
    %8 = arith.cmpi ne, %7, %c0_i32_3 : i32
    scf.if %8 {
      %c0_4 = arith.constant 0 : index
      %c0_5 = arith.constant 0 : index
      %9 = vector.load %arg3[%c0_4, %c0_5] : memref<1x256xf32, #tpu.memory_space<vmem>>, vector<1x256xf32>
      %10 = arith.maximumf %9, %2 : vector<1x256xf32>
      %c0_6 = arith.constant 0 : index
      %c0_7 = arith.constant 0 : index
      %11 = vector.load %arg3[%c0_6, %c0_7] : memref<1x256xf32, #tpu.memory_space<vmem>>, vector<1x256xf32>
      tpu.vector_store %arg3[%c0_6, %c0_7], %10 {strides = array<i32>} : memref<1x256xf32, #tpu.memory_space<vmem>>, vector<1x256xf32>,
    } else {
    }
    return
  }
  func.func @transform_0(%arg0: i32, %arg1: i32) -> (i32, i32) {
    %c0_i32 = arith.constant 0 : i32
    return %arg1, %arg0 : i32, i32
  }
  func.func @transform_1(%arg0: i32, %arg1: i32) -> (i32, i32) {
    %c0_i32 = arith.constant 0 : i32
    %c0_i32_0 = arith.constant 0 : i32
    return %c0_i32, %arg0 : i32, i32
  }
}

</mosaic_0001>

<bundles_post_ra>
// kernel: tpu_custom_call.1
= control target key start
LH: loop header
LB: loop body
LE: loop exit
PB: predicated region body
PF: predicated region fallthrough
CT: control target
= control target key end

     0   :  { %6 = vsyncpa [#allocation3], 0  ;;  %s194_s0 = inlined_call_operand.hbm [shape: f32[8,256], index: 0, kind: input, shape index: {}]   ;;  %s195_s1 = inlined_call_operand.hbm [shape: f32[1,256], index: 1, kind: output, shape index: {}]  }
   0x1   :  { %7 = vsyncpa [#allocation4], 0  ;;  %s157_s6 = smov [#allocation2]   ;;  %s109_s10 = scalar_lea.hbm %s194_s0, 256 }
   0x2   :  { %s14_s7 = sshll.u32 %s157_s6, 4  ;;  %p110_p0 = scmp.ne.s32.totalorder %s194_s0, %s109_s10  ;;  %s15_s7 = int_to_ptr.vmem [resolvable:$true] %s14_s7 }
   0x3   :  { %p113_p1 = scmp.lt.u32.totalorder %s109_s10, %s194_s0 }
   0x5   :  { %p115_p2 = pnand %p113_p1, %p110_p0 }
   0x7   :  { %118 = shalt.err (!%p115_p2)
}
   0x8   :  { %s119_s15 = scalar_lea.vmem %s15_s7, 256  ;;  %p124_p4 = scmp.lt.s32.totalorder %s15_s7, %s15_s7 }
   0x9   :  { %p120_p3 = scmp.ne.s32.totalorder %s15_s7, %s119_s15  ;;  %p125_p5 = scmp.lt.s32.totalorder %s119_s15, %s119_s15 }
   0xb   :  { %p126_p6 = por %p125_p5, %p124_p4 }
   0xd   :  { %p127_p7 = pnand %p126_p6, %p120_p3 }
   0xf   :  { %130 = shalt.err (!%p127_p7)
}
  0x10   :  { %17 = dma.hbm_to_vmem [thread:$0]  %s194_s0, 256, %s15_s7, [#allocation3]  }
  0x11   :  { %153 = dma.done.wait [#allocation3], 256  }
  0x12   :  { %154 = vsyncadd [#allocation3], 4294967040  ;;  %v21_v0 = vld [vmem:[#allocation2] sm:$0xff]  ;;  %v22_v1 = vld [vmem:[#allocation2 + $0x8] sm:$0xff]  ;;  %v158_v6 = vmov 1966171168   ;;  %v45_v8 = vlaneseq }
  0x13   :  { %v23_v2 = vrot.slane %v21_v0, 4  ;;  %v29_v3 = vrot.slane %v22_v1, 4  ;;  %v43_v7 = vunpack.c.l.s4 %v158_v6  ;;  %s159_s0 = smov [#allocation5]  }
  0x14   :  { %v46_v14 = vshrl.u32 %v45_v8, 7  ;;  %s97_s18 = sshll.u32 %s159_s0, 4  ;;  %vm59_vm0 = vcmp.lt.s32.totalorder %v45_v8, 256  ;;  %s98_s18 = int_to_ptr.vmem [resolvable:$true] %s97_s18 }
  0x15   :  { %v24_v4 = vmax.f32 %v21_v0, %v23_v2  ;;  %v30_v5 = vmax.f32 %v22_v1, %v29_v3  ;;  %v44_v13 = vunpack.c.0.s8 %v43_v7  ;;  %s131_s19 = scalar_lea.vmem %s98_s18, 32  ;;  %p136_p9 = scmp.lt.s32.totalorder %s98_s18, %s98_s18 }
  0x16   :  { %p132_p8 = scmp.ne.s32.totalorder %s98_s18, %s131_s19  ;;  %p137_p10 = scmp.lt.s32.totalorder %s131_s19, %s131_s19 }
  0x17   :  { %v25_v9 = vrot.slane %v24_v4, 2  ;;  %v31_v10 = vrot.slane %v30_v5, 2  ;;  %v47_v19 = vsub.s32 %v44_v13, %v46_v14 }
  0x18   :  { %p138_p11 = por %p137_p10, %p136_p9 }
  0x19   :  { %v26_v11 = vmax.f32 %v24_v4, %v25_v9  ;;  %v32_v12 = vmax.f32 %v30_v5, %v31_v10 }
  0x1a   :  { %p139_p12 = pnand %p138_p11, %p132_p8 }
  0x1b   :  { %v27_v15 = vrot.slane %v26_v11, 1  ;;  %v33_v16 = vrot.slane %v32_v12, 1 }
  0x1d   :  { %v28_v17 = vmax.f32 %v26_v11, %v27_v15  ;;  %v34_v18 = vmax.f32 %v32_v12, %v33_v16 }
  0x1f   :  { %v41_v20 = vcombine.low %v28_v17, %v34_v18 }
  0x21   :  { %v48_v21 = vrot.slane %v41_v20, %v47_v19 }
  0x23   :  { %v55_v22 = vrot.slane %v48_v21, %v47_v19 }
  0x25   :  { %61 = vst.msk [vmem:[#allocation5] sm:$0x3] %vm59_vm0, %v55_v22 }
  0x26   :  { %142 = shalt.err (!%p139_p12)
}
  0x27   :  { %s143_s22 = scalar_lea.hbm %s195_s1, 32 }
  0x28   :  { %p144_p13 = scmp.ne.s32.totalorder %s195_s1, %s143_s22  ;;  %p147_p0 = scmp.lt.u32.totalorder %s143_s22, %s195_s1 }
  0x2a   :  { %p149_p1 = pnand %p147_p0, %p144_p13 }
  0x2c   :  { %152 = shalt.err (!%p149_p1)
}
  0x2d   :  { %100 = dma.vmem_to_hbm [thread:$0]  %s98_s18, 32, %s195_s1, [#allocation4]  }
  0x2e   :  { %155 = dma.done.wait [#allocation4], 32  }
  0x2f   :  { %156 = vsyncadd [#allocation4], 4294967264 }
  0x30   :  { %104 = vsyncpa [#allocation3], 1 }
  0x31   :  { %105 = vsyncpa [#allocation4], 1 }

</bundles_post_ra>
